<compile_context>
chip_gen: v5e
topology: v5e:2x2
jax: 0.10.0
libtpu: 0.0.40
codegen_flags: <defaults>
</compile_context>

<pallas_src>
import functools

import jax
import jax.numpy as jnp
from jax.experimental import pallas as pl
from jax.experimental.pallas import tpu as pltpu

_K = 4            # in_features (fixed by the module spec)
_N_SUB = 8        # out_features padded to one sublane group
_LANE = 128       # lane width; batch is padded to a multiple of this
_MAX_M_TILE = 1024  # largest batch (lane) tile per grid step


def _round_up(v, mult):
    return ((v + mult - 1) // mult) * mult


def _dict_dense_kernel(w_ref, x_ref, o_ref):
    """out^T tile = W^T @ x^T for one lane-tile of the batch.

      w_ref: (8, 4)       chosen weight, transposed, out_features zero-padded to 8
      x_ref: (4, m_tile)  activations, transposed, batch on lanes (m_tile % 128 == 0)
      o_ref: (8, m_tile)  transposed output tile (lane-dense, unmasked vst)

    K == 4 and the accumulator is only 8 sublanes tall (<= 8 live vregs even at
    m_tile = 1024), so the contraction is four unrolled broadcast FMAs on the
    VPU — cheaper than an MXU push/pop for this memory-bound shape and with
    trivially bounded vreg pressure.
    """
    w = w_ref[...]                       # (8, 4)
    x = x_ref[...]                       # (4, m_tile)
    acc = w[:, 0:1] * x[0:1, :]          # (8, m_tile)
    for k in range(1, _K):               # static unroll, K == 4
        acc = acc + w[:, k:k + 1] * x[k:k + 1, :]
    o_ref[...] = acc.astype(o_ref.dtype)


@functools.partial(jax.jit, static_argnums=(2,))
def _dict_dense_forward(x, w_t_pad, n_out):
    """Fused pad -> kernel -> slice.  x: (m, 4) f32, w_t_pad: (8, 4) f32."""
    m, k = x.shape                                       # static under jit
    m_tile = min(_MAX_M_TILE, _round_up(max(m, 1), _LANE))
    m_pad = _round_up(m, m_tile)

    # Transpose + zero-pad inside the same jit (layout plumbing, one dispatch).
    xt = jnp.zeros((k, m_pad), jnp.float32).at[:, :m].set(x.T)

    out_t = pl.pallas_call(
        _dict_dense_kernel,
        out_shape=jax.ShapeDtypeStruct((_N_SUB, m_pad), jnp.float32),
        grid=(m_pad // m_tile,),
        in_specs=[
            # weight slab: grid-invariant block index -> DMA'd once
            pl.BlockSpec((_N_SUB, _K), lambda i: (0, 0),
                         memory_space=pltpu.MemorySpace.VMEM),
            # activations: tile the batch along lanes
            pl.BlockSpec((_K, m_tile), lambda i: (0, i),
                         memory_space=pltpu.MemorySpace.VMEM),
        ],
        out_specs=pl.BlockSpec((_N_SUB, m_tile), lambda i: (0, i),
                               memory_space=pltpu.MemorySpace.VMEM),
        compiler_params=pltpu.CompilerParams(
            dimension_semantics=("parallel",)),
    )(w_t_pad, xt)

    # Slice true out_features / batch and transpose back, still inside the jit.
    return out_t[:n_out, :m].T                           # (m, n_out)


class MyDictDense:
    """JAX/Pallas port of the PyTorch MyDictDense module."""

    def __init__(self, key):
        k1, k2, k3 = jax.random.split(key, 3)
        # Deterministic "randn"-style initialization (standard normal),
        # PyTorch layout: W is (in_features, out_features).
        self.params = {
            "linear1": jax.random.normal(k1, (4, 4), dtype=jnp.float32),
            "linear2": jax.random.normal(k2, (4, 1), dtype=jnp.float32),
            "linear3": jax.random.normal(k3, (4, 2), dtype=jnp.float32),
        }
        # Pre-transpose + sublane-pad each weight to (8, 4) once at init so the
        # forward path has no per-call host->device transfer or eager padding.
        self._w_t_pad = {
            name: jnp.zeros((_N_SUB, _K), jnp.float32).at[:w.shape[1], :].set(w.T)
            for name, w in self.params.items()
        }

    def __call__(self, x, choice="linear1"):
        x = jnp.asarray(x, jnp.float32)
        assert x.ndim == 2 and x.shape[1] == _K
        n_out = self.params[choice].shape[1]
        return _dict_dense_forward(x, self._w_t_pad[choice], n_out)


if __name__ == "__main__":
    key = jax.random.PRNGKey(0)
    model = MyDictDense(key)

    # Matches the reference script: x = torch.ones(1, 4)
    x = jnp.ones((1, 4), dtype=jnp.float32)
    for choice in ("linear1", "linear2", "linear3"):
        out = jax.block_until_ready(model(x, choice=choice))
        ref = x @ model.params[choice]
        assert out.shape == ref.shape
        assert jnp.allclose(out, ref, atol=1e-5, rtol=1e-5)

    # Small-batch sanity check (pads 5 -> 128 lanes; same fused jit path).
    xb = jax.random.normal(jax.random.PRNGKey(1), (5, 4), dtype=jnp.float32)
    for choice in ("linear1", "linear2", "linear3"):
        out = jax.block_until_ready(model(xb, choice=choice))
        ref = xb @ model.params[choice]
        assert out.shape == ref.shape
        assert jnp.allclose(out, ref, atol=1e-5, rtol=1e-5)

    # Non-multiple-of-128 batch (exercises lane padding + tail slice).
    xc = jax.random.normal(jax.random.PRNGKey(2), (200, 4), dtype=jnp.float32)
    out = jax.block_until_ready(model(xc, choice="linear3"))
    ref = xc @ model.params["linear3"]
    assert out.shape == ref.shape
    assert jnp.allclose(out, ref, atol=1e-4, rtol=1e-5)

    print("KERNEL_OK")
</pallas_src>

<mosaic_0001>
module attributes {stable_mosaic.version = 11 : i64} {
  func.func @_dict_dense_kernel(%arg0: i32, %arg1: memref<8x4xf32, #tpu.memory_space<vmem>>, %arg2: memref<4x128xf32, #tpu.memory_space<vmem>>, %arg3: memref<8x128xf32, #tpu.memory_space<vmem>>) attributes {dimension_semantics = [#tpu.dimension_semantics<parallel>], iteration_bounds = array<i64: 1>, scalar_prefetch = 0 : i64, scratch_operands = 0 : i64, tpu.core_type = #tpu.core_type<tc>, window_params = [{pipeline_mode = #tpu.pipeline_mode<synchronous>, transform_indices = @transform_0, window_bounds = array<i64: 8, 4>}, {transform_indices = @transform_1, window_bounds = array<i64: 4, 128>}, {transform_indices = @transform_2, window_bounds = array<i64: 8, 128>}]} {
    %c0 = arith.constant 0 : index
    %c0_0 = arith.constant 0 : index
    %0 = vector.load %arg1[%c0, %c0_0] : memref<8x4xf32, #tpu.memory_space<vmem>>, vector<8x4xf32>
    %c0_1 = arith.constant 0 : index
    %c0_2 = arith.constant 0 : index
    %1 = vector.load %arg2[%c0_1, %c0_2] : memref<4x128xf32, #tpu.memory_space<vmem>>, vector<4x128xf32>
    %2 = vector.extract_strided_slice %0 {offsets = [0, 0], sizes = [8, 1], strides = [1, 1]} : vector<8x4xf32> to vector<8x1xf32>
    %3 = vector.extract_strided_slice %1 {offsets = [0, 0], sizes = [1, 128], strides = [1, 1]} : vector<4x128xf32> to vector<1x128xf32>
    %4 = vector.broadcast %2 : vector<8x1xf32> to vector<8x128xf32>
    %5 = vector.broadcast %3 : vector<1x128xf32> to vector<8x128xf32>
    %6 = arith.mulf %4, %5 : vector<8x128xf32>
    %7 = vector.extract_strided_slice %0 {offsets = [0, 1], sizes = [8, 1], strides = [1, 1]} : vector<8x4xf32> to vector<8x1xf32>
    %8 = vector.extract_strided_slice %1 {offsets = [1, 0], sizes = [1, 128], strides = [1, 1]} : vector<4x128xf32> to vector<1x128xf32>
    %9 = vector.broadcast %7 : vector<8x1xf32> to vector<8x128xf32>
    %10 = vector.broadcast %8 : vector<1x128xf32> to vector<8x128xf32>
    %11 = arith.mulf %9, %10 : vector<8x128xf32>
    %12 = arith.addf %6, %11 : vector<8x128xf32>
    %13 = vector.extract_strided_slice %0 {offsets = [0, 2], sizes = [8, 1], strides = [1, 1]} : vector<8x4xf32> to vector<8x1xf32>
    %14 = vector.extract_strided_slice %1 {offsets = [2, 0], sizes = [1, 128], strides = [1, 1]} : vector<4x128xf32> to vector<1x128xf32>
    %15 = vector.broadcast %13 : vector<8x1xf32> to vector<8x128xf32>
    %16 = vector.broadcast %14 : vector<1x128xf32> to vector<8x128xf32>
    %17 = arith.mulf %15, %16 : vector<8x128xf32>
    %18 = arith.addf %12, %17 : vector<8x128xf32>
    %19 = vector.extract_strided_slice %0 {offsets = [0, 3], sizes = [8, 1], strides = [1, 1]} : vector<8x4xf32> to vector<8x1xf32>
    %20 = vector.extract_strided_slice %1 {offsets = [3, 0], sizes = [1, 128], strides = [1, 1]} : vector<4x128xf32> to vector<1x128xf32>
    %21 = vector.broadcast %19 : vector<8x1xf32> to vector<8x128xf32>
    %22 = vector.broadcast %20 : vector<1x128xf32> to vector<8x128xf32>
    %23 = arith.mulf %21, %22 : vector<8x128xf32>
    %24 = arith.addf %18, %23 : vector<8x128xf32>
    %c0_3 = arith.constant 0 : index
    %c0_4 = arith.constant 0 : index
    %25 = vector.load %arg3[%c0_3, %c0_4] : memref<8x128xf32, #tpu.memory_space<vmem>>, vector<8x128xf32>
    tpu.vector_store %arg3[%c0_3, %c0_4], %24 {strides = array<i32>} : memref<8x128xf32, #tpu.memory_space<vmem>>, vector<8x128xf32>,
    return
  }
  func.func @transform_0(%arg0: i32) -> (i32, i32) {
    %c0_i32 = arith.constant 0 : i32
    %c0_i32_0 = arith.constant 0 : i32
    %c0_i32_1 = arith.constant 0 : i32
    return %c0_i32, %c0_i32_0 : i32, i32
  }
  func.func @transform_1(%arg0: i32) -> (i32, i32) {
    %c0_i32 = arith.constant 0 : i32
    %c0_i32_0 = arith.constant 0 : i32
    return %c0_i32, %arg0 : i32, i32
  }
  func.func @transform_2(%arg0: i32) -> (i32, i32) {
    %c0_i32 = arith.constant 0 : i32
    %c0_i32_0 = arith.constant 0 : i32
    return %c0_i32, %arg0 : i32, i32
  }
}

</mosaic_0001>

<bundles_post_ra>
// kernel: _dict_dense_forward.1
= control target key start
LH: loop header
LB: loop body
LE: loop exit
PB: predicated region body
PF: predicated region fallthrough
CT: control target
= control target key end

     0   :  { %v55_v0 = vmov 0   ;;  %v56_v2 = vmov 2   ;;  %v57_v3 = vmov 1   ;;  %v58_v4 = vmov 3   ;;  %s83_s0 = inlined_call_operand.vmem [shape: f32[8,4], index: 0, kind: input, shape index: {}]   ;;  %s84_s1 = inlined_call_operand.vmem [shape: f32[4,128], index: 1, kind: input, shape index: {}]   ;;  %s85_s2 = inlined_call_operand.vmem [shape: f32[8,128], index: 2, kind: output, shape index: {}]  }
   0x1   :  { %50 = vset.pattern.permute.xlu0 %v55_v0  ;;  %v11_v1 = vld [vmem:[%s83_s0] sm:$0xff]  ;;  %52 = vset.pattern.permute.xlu1 %v56_v2 }
   0x2   :  { %15 = vperm.xlu0 %50, %v11_v1   ;;  %28 = vperm.xlu1 %52, %v11_v1   ;;  %v12_v7 = vld [vmem:[%s84_s1] sm:$0xf] }
   0x3   :  { %v18_v8 = vperm.slane %v12_v7, 0  ;;  %v24_v9 = vperm.slane %v12_v7, 1  ;;  %v31_v10 = vperm.slane %v12_v7, 2  ;;  %v38_v11 = vperm.slane %v12_v7, 3 }
   0xa   :  { %51 = vset.pattern.permute.xlu0 %v57_v3  ;;  %53 = vset.pattern.permute.xlu1 %v58_v4 }
   0xb   :  { %21 = vperm.xlu0 %51, %v11_v1   ;;  %35 = vperm.xlu1 %53, %v11_v1  }
  0x13   :  { %54 = vset.pattern.permute.xlu0 %v58_v4 }
  0x74   :  { %v16_v5 = vpop.permute.xlu0 %15  ;;  %v29_v6 = vpop.permute.xlu1 %28 }
  0x75   :  { %v19_v14 = vmul.f32 %v18_v8, %v16_v5  ;;  %v32_v16 = vmul.f32 %v31_v10, %v29_v6 }
  0x7d   :  { %v22_v12 = vpop.permute.xlu0 %21  ;;  %v36_v13 = vpop.permute.xlu1 %35 }
  0x7e   :  { %v25_v15 = vmul.f32 %v24_v9, %v22_v12  ;;  %v39_v18 = vmul.f32 %v38_v11, %v36_v13 }
  0x80   :  { %v26_v17 = vadd.f32 %v25_v15, %v19_v14 }
  0x82   :  { %v33_v19 = vadd.f32 %v32_v16, %v26_v17 }
  0x84   :  { %v40_v20 = vadd.f32 %v39_v18, %v33_v19 }
  0x86   :  { %41 = vst [vmem:[%s85_s2] sm:$0xff] %v40_v20 }

</bundles_post_ra>
